<compile_context>
chip_gen: v7x
topology: tpu7x:2x2x1
jax: 0.10.0
libtpu: 0.0.40
codegen_flags: <defaults>
</compile_context>

<pallas_src>
import functools

import jax
import jax.numpy as jnp
from jax import lax
from jax.experimental import pallas as pl
from jax.experimental.pallas import tpu as pltpu


def _vmem_capacity_bytes():
    """Physical VMEM of the current generation; conservative fallback = v7x (64 MiB)."""
    try:
        return int(pltpu.get_tpu_info().vmem_capacity_bytes)
    except Exception:  # pragma: no cover - e.g. older jax / non-TPU tracing
        return 64 * 1024 * 1024


def _choose_batch_block(B, Q, per_item_bytes, budget_bytes):
    """Largest batch block that (a) divides B, (b) keeps the per-step working set
    under `budget_bytes`, (c) keeps the output block sublane-aligned, and
    (d) leaves at least 2 grid steps when B >= 2 (megacore + pipeline overlap)."""
    def aligned(c):
        return c == B or (c * Q) % 8 == 0

    best = None
    for cand in range(1, B + 1):
        if B % cand or not aligned(cand) or cand * per_item_bytes > budget_bytes:
            continue
        if B // cand < min(2, B):          # keep >= 2 grid steps when possible
            continue
        best = cand
    if best is None:                        # relax the multi-step requirement
        for cand in range(1, B + 1):
            if B % cand or not aligned(cand) or cand * per_item_bytes > budget_bytes:
                continue
            best = cand
    return best if best is not None else B


def _make_kernel(F_, C, S, Q, D, b_blk, K):
    QD = Q * D
    CSS = C * S * S
    BQ = b_blk * Q

    def kernel(x_ref, w_ref, b_ref, o_ref, taps_ref, tf_ref):
        # x_ref:    (b_blk, C, Q*D) f32   raw simmat rows, (q, d) flattened on lanes
        # w_ref:    (F, C*S*S)      f32   conv weights, column order (dy, dx, c)
        # b_ref:    (F, 1)          f32   conv bias
        # o_ref:    (b_blk*Q, K)    f32   top-k output slab
        # taps_ref: (C*S*S, b_blk*Q*D)    VMEM scratch: on-chip im2col
        # tf_ref:   (b_blk*Q, D)          VMEM scratch: per-(b, q) filter maxima
        f32 = jnp.float32

        # d position of every flattened (q, d) lane; used to zero lanes where
        # d + dx crosses the document boundary (this *is* ConstantPad2d's zero pad).
        dpos = lax.broadcasted_iota(jnp.int32, (C, QD), 1) % D

        # ---- on-chip im2col: build the (CSS, b_blk*Q*D) tap matrix ----------------
        for ib in range(b_blk):
            x_bc = x_ref[ib]                                    # (C, QD) f32
            lo = ib * QD
            for dy in range(S):
                for dx in range(S):
                    s = dy * D + dx                             # flat lane shift
                    if s == 0:
                        tap = x_bc
                    elif s >= QD:                               # fully in the zero pad
                        tap = jnp.zeros((C, QD), f32)
                    else:
                        # dest lane i <- src lane i + s ; appended zeros cover the
                        # q + dy >= Q overhang exactly (bottom zero padding).
                        tap = jnp.concatenate(
                            [x_bc[:, s:], jnp.zeros((C, s), f32)], axis=1)
                    if dx > 0 and s < QD:
                        # right zero padding: kill lanes where d + dx >= D
                        tap = jnp.where(dpos < D - dx, tap, 0.0)
                    r0 = (dy * S + dx) * C
                    taps_ref[r0:r0 + C, lo:lo + QD] = tap

        # ---- fused Conv2d: ONE (F, CSS) x (CSS, b_blk*Q*D) MXU matmul -------------
        acc = jnp.dot(w_ref[...], taps_ref[...],
                      preferred_element_type=jnp.float32,
                      precision=lax.Precision.HIGHEST)          # (F, BQ*D) f32
        acc = jnp.maximum(acc + b_ref[...], 0.0)                # bias + ReLU

        # ---- max over the filter dim (single 8-row sublane reduce) ----------------
        top = jnp.max(acc, axis=0, keepdims=True)               # (1, BQ*D)

        # Regroup the tiny reduced row into (BQ, D) with BQ plain lane slices
        # (no relayout of the full accumulator, no generic reshape).
        for g in range(BQ):
            tf_ref[g:g + 1, :] = top[:, g * D:(g + 1) * D]

        # ---- iterative top-k over D for every (b, q) row --------------------------
        vals = tf_ref[...]                                      # (BQ, D) f32, >= 0
        col = lax.broadcasted_iota(jnp.int32, (BQ, D), 1)
        kcol = lax.broadcasted_iota(jnp.int32, (BQ, K), 1)
        out = jnp.zeros((BQ, K), f32)
        neg_inf = jnp.float32(-jnp.inf)
        # K is tiny and static: this Python loop is already fully unrolled
        # straight-line code (equivalent to lax.fori_loop(..., unroll=True)).
        for kk in range(K):
            m = jnp.max(vals, axis=-1, keepdims=True)           # (BQ, 1)
            out = jnp.where(kcol == kk, m, out)
            if kk + 1 < K:
                # Mask only the FIRST element attaining the max so duplicated
                # values keep torch.topk's multiplicity semantics.
                first = jnp.min(jnp.where(vals == m, col, D),
                                axis=-1, keepdims=True)
                vals = jnp.where(col == first, neg_inf, vals)

        o_ref[...] = out                                        # one store per step

    return kernel


@functools.partial(jax.jit, static_argnames=("shape", "k"))
def pacrr_conv_max2d(simmat, weight, bias, *, shape, k):
    """simmat: (B, C, Q, D) f32, weight: (F, C, shape, shape), bias: (F,)."""
    B, C, Q, D = simmat.shape
    F_ = weight.shape[0]
    S = shape
    CSS = C * S * S
    QD = Q * D
    assert k <= D, "top-k size k must not exceed document length D"

    # Glue is traffic-free: layout-preserving flatten of (Q, D) onto lanes, plus a
    # tiny weight reorder so each in-kernel tap writes a contiguous C-row slab.
    x_flat = simmat.astype(jnp.float32).reshape(B, C, QD)
    w2 = jnp.transpose(weight.astype(jnp.float32), (0, 2, 3, 1)).reshape(F_, CSS)
    b2 = bias.astype(jnp.float32).reshape(F_, 1)

    # Generation-aware VMEM budget: double-buffered input block + tap scratch +
    # f32 accumulator + small temporaries, all per batch item.
    vmem_cap = _vmem_capacity_bytes()
    vmem_limit = min(vmem_cap // 2, 64 * 1024 * 1024)       # 32 MiB on v7x, 64 on v5e/v6e
    budget = vmem_limit // 4                                # per-step working-set budget
    per_item_bytes = 4 * QD * (2 * C + CSS + F_ + 6)
    b_blk = _choose_batch_block(B, Q, per_item_bytes, budget)
    n_blk = B // b_blk

    kernel = _make_kernel(F_, C, S, Q, D, b_blk, k)

    flops = 2 * F_ * CSS * B * QD
    bytes_accessed = (x_flat.size * 4 + w2.size * 4 + b2.size * 4 + B * Q * k * 4)

    out = pl.pallas_call(
        kernel,
        out_shape=jax.ShapeDtypeStruct((B * Q, k), jnp.float32),
        grid_spec=pltpu.PrefetchScalarGridSpec(
            num_scalar_prefetch=0,
            grid=(n_blk,),
            in_specs=[
                pl.BlockSpec((b_blk, C, QD), lambda i: (i, 0, 0)),
                pl.BlockSpec((F_, CSS), lambda i: (0, 0)),
                pl.BlockSpec((F_, 1), lambda i: (0, 0)),
            ],
            out_specs=pl.BlockSpec((b_blk * Q, k), lambda i: (i, 0)),
            scratch_shapes=[
                pltpu.VMEM((CSS, b_blk * QD), jnp.float32),   # on-chip im2col taps
                pltpu.VMEM((b_blk * Q, D), jnp.float32),      # per-(b, q) filter maxima
            ],
        ),
        compiler_params=pltpu.CompilerParams(
            dimension_semantics=("parallel",),
            vmem_limit_bytes=vmem_limit,
        ),
        cost_estimate=pl.CostEstimate(
            flops=flops, transcendentals=0, bytes_accessed=bytes_accessed),
    )(x_flat, w2, b2)
    return out.reshape(B, Q, k)


def _reference(simmat, weight, bias, shape, k):
    """Pure-JAX f32 reference matching the PyTorch module."""
    S = shape
    xp = jnp.pad(simmat, ((0, 0), (0, 0), (0, S - 1), (0, S - 1)))
    conv = lax.conv_general_dilated(
        xp, weight, window_strides=(1, 1), padding="VALID",
        dimension_numbers=("NCHW", "OIHW", "NCHW"),
        preferred_element_type=jnp.float32,
        precision=lax.Precision.HIGHEST,
    )
    conv = jax.nn.relu(conv + bias[None, :, None, None])
    top_filters = conv.max(axis=1)                 # (B, Q, D)
    top_toks = lax.top_k(top_filters, k)[0]        # (B, Q, k)
    return top_toks


if __name__ == "__main__":
    # Module config (small, consistent with PACRRConvMax2dModule semantics).
    shape = 3        # conv kernel size (n-gram size)
    n_filters = 8
    k = 4
    channels = 4
    B, Q, D = 2, 8, 16

    key = jax.random.PRNGKey(0)
    kx, kw, kb = jax.random.split(key, 3)

    simmat = jax.random.normal(kx, (B, channels, Q, D), dtype=jnp.float32)
    weight = jax.random.normal(
        kw, (n_filters, channels, shape, shape), dtype=jnp.float32) * 0.1
    bias = jax.random.normal(kb, (n_filters,), dtype=jnp.float32) * 0.1

    out = pacrr_conv_max2d(simmat, weight, bias, shape=shape, k=k)
    out = jax.block_until_ready(out)

    ref = jax.block_until_ready(_reference(simmat, weight, bias, shape, k))
    assert out.shape == (B, Q, k), out.shape
    err = float(jnp.max(jnp.abs(out - ref)))
    assert jnp.allclose(out, ref, atol=2e-3, rtol=2e-3), (
        f"mismatch vs reference: max abs err {err}")

    print("KERNEL_OK")
</pallas_src>

<mosaic_0001>
module attributes {stable_mosaic.version = 11 : i64} {
  func.func @kernel(%arg0: i32, %arg1: memref<1x4x128xf32, #tpu.memory_space<vmem>>, %arg2: memref<8x36xf32, #tpu.memory_space<vmem>>, %arg3: memref<8x1xf32, #tpu.memory_space<vmem>>, %arg4: memref<8x4xf32, #tpu.memory_space<vmem>>, %arg5: memref<36x128xf32, #tpu.memory_space<vmem>>, %arg6: memref<8x16xf32, #tpu.memory_space<vmem>>) attributes {dimension_semantics = [#tpu.dimension_semantics<parallel>], iteration_bounds = array<i64: 2>, scalar_prefetch = 0 : i64, scratch_operands = 2 : i64, tpu.core_type = #tpu.core_type<tc>, window_params = [{transform_indices = @transform_0, window_bounds = array<i64: 1, 4, 128>}, {pipeline_mode = #tpu.pipeline_mode<synchronous>, transform_indices = @transform_1, window_bounds = array<i64: 8, 36>}, {pipeline_mode = #tpu.pipeline_mode<synchronous>, transform_indices = @transform_2, window_bounds = array<i64: 8, 1>}, {transform_indices = @transform_3, window_bounds = array<i64: 8, 4>}]} {
    %0 = tpu.iota {dimensions = array<i32: 1>} : vector<4x128xi32>
    %c16_i32 = arith.constant 16 : i32
    %c0_i32 = arith.constant 0 : i32
    %1 = arith.cmpi eq, %c16_i32, %c0_i32 : i32
    %c1_i32 = arith.constant 1 : i32
    %2 = arith.select %1, %c1_i32, %c16_i32 : i32
    %3 = vector.broadcast %2 : i32 to vector<4x128xi32>
    %4 = arith.remsi %0, %3 : vector<4x128xi32>
    %c0_i32_0 = arith.constant 0 : i32
    %5 = vector.broadcast %c0_i32_0 : i32 to vector<4x128xi32>
    %6 = arith.cmpi ne, %4, %5 : vector<4x128xi32>
    %c0_i32_1 = arith.constant 0 : i32
    %7 = vector.broadcast %c0_i32_1 : i32 to vector<4x128xi32>
    %8 = arith.cmpi slt, %4, %7 : vector<4x128xi32>
    %c0_i32_2 = arith.constant 0 : i32
    %9 = arith.cmpi slt, %2, %c0_i32_2 : i32
    %10 = vector.broadcast %9 : i1 to vector<4x128xi1>
    %11 = vector.broadcast %10 : vector<4x128xi1> to vector<4x128xi1>
    %12 = arith.xori %8, %11 : vector<4x128xi1>
    %13 = arith.andi %12, %6 : vector<4x128xi1>
    %14 = vector.broadcast %2 : i32 to vector<4x128xi32>
    %15 = arith.addi %4, %14 : vector<4x128xi32>
    %16 = arith.select %13, %15, %4 : vector<4x128xi1>, vector<4x128xi32>
    %c0 = arith.constant 0 : index
    %c0_3 = arith.constant 0 : index
    %c0_4 = arith.constant 0 : index
    %17 = vector.load %arg1[%c0, %c0_3, %c0_4] : memref<1x4x128xf32, #tpu.memory_space<vmem>>, vector<1x4x128xf32>
    %18 = vector.shape_cast %17 : vector<1x4x128xf32> to vector<4x128xf32>
    %c0_5 = arith.constant 0 : index
    %c0_6 = arith.constant 0 : index
    %19 = vector.load %arg5[%c0_5, %c0_6] : memref<36x128xf32, #tpu.memory_space<vmem>>, vector<4x128xf32>
    tpu.vector_store %arg5[%c0_5, %c0_6], %18 {strides = array<i32>} : memref<36x128xf32, #tpu.memory_space<vmem>>, vector<4x128xf32>,
    %20 = vector.extract_strided_slice %18 {offsets = [0, 1], sizes = [4, 127], strides = [1, 1]} : vector<4x128xf32> to vector<4x127xf32>
    %cst = arith.constant 0.000000e+00 : f32
    %21 = vector.broadcast %cst : f32 to vector<4x1xf32>
    %22 = tpu.concatenate %20, %21 in 1 : vector<4x127xf32>, vector<4x1xf32> -> vector<4x128xf32>
    %c15_i32 = arith.constant 15 : i32
    %23 = vector.broadcast %c15_i32 : i32 to vector<4x128xi32>
    %24 = arith.cmpi slt, %16, %23 : vector<4x128xi32>
    %cst_7 = arith.constant 0.000000e+00 : f32
    %25 = vector.broadcast %cst_7 : f32 to vector<4x128xf32>
    %26 = arith.select %24, %22, %25 : vector<4x128xi1>, vector<4x128xf32>
    %c4 = arith.constant 4 : index
    %c0_8 = arith.constant 0 : index
    %27 = vector.load %arg5[%c4, %c0_8] : memref<36x128xf32, #tpu.memory_space<vmem>>, vector<4x128xf32>
    tpu.vector_store %arg5[%c4, %c0_8], %26 {strides = array<i32>} : memref<36x128xf32, #tpu.memory_space<vmem>>, vector<4x128xf32>,
    %28 = vector.extract_strided_slice %18 {offsets = [0, 2], sizes = [4, 126], strides = [1, 1]} : vector<4x128xf32> to vector<4x126xf32>
    %cst_9 = arith.constant 0.000000e+00 : f32
    %29 = vector.broadcast %cst_9 : f32 to vector<4x2xf32>
    %30 = tpu.concatenate %28, %29 in 1 : vector<4x126xf32>, vector<4x2xf32> -> vector<4x128xf32>
    %c14_i32 = arith.constant 14 : i32
    %31 = vector.broadcast %c14_i32 : i32 to vector<4x128xi32>
    %32 = arith.cmpi slt, %16, %31 : vector<4x128xi32>
    %cst_10 = arith.constant 0.000000e+00 : f32
    %33 = vector.broadcast %cst_10 : f32 to vector<4x128xf32>
    %34 = arith.select %32, %30, %33 : vector<4x128xi1>, vector<4x128xf32>
    %c8 = arith.constant 8 : index
    %c0_11 = arith.constant 0 : index
    %35 = vector.load %arg5[%c8, %c0_11] : memref<36x128xf32, #tpu.memory_space<vmem>>, vector<4x128xf32>
    tpu.vector_store %arg5[%c8, %c0_11], %34 {strides = array<i32>} : memref<36x128xf32, #tpu.memory_space<vmem>>, vector<4x128xf32>,
    %36 = vector.extract_strided_slice %18 {offsets = [0, 16], sizes = [4, 112], strides = [1, 1]} : vector<4x128xf32> to vector<4x112xf32>
    %cst_12 = arith.constant 0.000000e+00 : f32
    %37 = vector.broadcast %cst_12 : f32 to vector<4x16xf32>
    %38 = tpu.concatenate %36, %37 in 1 : vector<4x112xf32>, vector<4x16xf32> -> vector<4x128xf32>
    %c12 = arith.constant 12 : index
    %c0_13 = arith.constant 0 : index
    %39 = vector.load %arg5[%c12, %c0_13] : memref<36x128xf32, #tpu.memory_space<vmem>>, vector<4x128xf32>
    tpu.vector_store %arg5[%c12, %c0_13], %38 {strides = array<i32>} : memref<36x128xf32, #tpu.memory_space<vmem>>, vector<4x128xf32>,
    %40 = vector.extract_strided_slice %18 {offsets = [0, 17], sizes = [4, 111], strides = [1, 1]} : vector<4x128xf32> to vector<4x111xf32>
    %cst_14 = arith.constant 0.000000e+00 : f32
    %41 = vector.broadcast %cst_14 : f32 to vector<4x17xf32>
    %42 = tpu.concatenate %40, %41 in 1 : vector<4x111xf32>, vector<4x17xf32> -> vector<4x128xf32>
    %c15_i32_15 = arith.constant 15 : i32
    %43 = vector.broadcast %c15_i32_15 : i32 to vector<4x128xi32>
    %44 = arith.cmpi slt, %16, %43 : vector<4x128xi32>
    %cst_16 = arith.constant 0.000000e+00 : f32
    %45 = vector.broadcast %cst_16 : f32 to vector<4x128xf32>
    %46 = arith.select %44, %42, %45 : vector<4x128xi1>, vector<4x128xf32>
    %c16 = arith.constant 16 : index
    %c0_17 = arith.constant 0 : index
    %47 = vector.load %arg5[%c16, %c0_17] : memref<36x128xf32, #tpu.memory_space<vmem>>, vector<4x128xf32>
    tpu.vector_store %arg5[%c16, %c0_17], %46 {strides = array<i32>} : memref<36x128xf32, #tpu.memory_space<vmem>>, vector<4x128xf32>,
    %48 = vector.extract_strided_slice %18 {offsets = [0, 18], sizes = [4, 110], strides = [1, 1]} : vector<4x128xf32> to vector<4x110xf32>
    %cst_18 = arith.constant 0.000000e+00 : f32
    %49 = vector.broadcast %cst_18 : f32 to vector<4x18xf32>
    %50 = tpu.concatenate %48, %49 in 1 : vector<4x110xf32>, vector<4x18xf32> -> vector<4x128xf32>
    %c14_i32_19 = arith.constant 14 : i32
    %51 = vector.broadcast %c14_i32_19 : i32 to vector<4x128xi32>
    %52 = arith.cmpi slt, %16, %51 : vector<4x128xi32>
    %cst_20 = arith.constant 0.000000e+00 : f32
    %53 = vector.broadcast %cst_20 : f32 to vector<4x128xf32>
    %54 = arith.select %52, %50, %53 : vector<4x128xi1>, vector<4x128xf32>
    %c20 = arith.constant 20 : index
    %c0_21 = arith.constant 0 : index
    %55 = vector.load %arg5[%c20, %c0_21] : memref<36x128xf32, #tpu.memory_space<vmem>>, vector<4x128xf32>
    tpu.vector_store %arg5[%c20, %c0_21], %54 {strides = array<i32>} : memref<36x128xf32, #tpu.memory_space<vmem>>, vector<4x128xf32>,
    %56 = vector.extract_strided_slice %18 {offsets = [0, 32], sizes = [4, 96], strides = [1, 1]} : vector<4x128xf32> to vector<4x96xf32>
    %cst_22 = arith.constant 0.000000e+00 : f32
    %57 = vector.broadcast %cst_22 : f32 to vector<4x32xf32>
    %58 = tpu.concatenate %56, %57 in 1 : vector<4x96xf32>, vector<4x32xf32> -> vector<4x128xf32>
    %c24 = arith.constant 24 : index
    %c0_23 = arith.constant 0 : index
    %59 = vector.load %arg5[%c24, %c0_23] : memref<36x128xf32, #tpu.memory_space<vmem>>, vector<4x128xf32>
    tpu.vector_store %arg5[%c24, %c0_23], %58 {strides = array<i32>} : memref<36x128xf32, #tpu.memory_space<vmem>>, vector<4x128xf32>,
    %60 = vector.extract_strided_slice %18 {offsets = [0, 33], sizes = [4, 95], strides = [1, 1]} : vector<4x128xf32> to vector<4x95xf32>
    %cst_24 = arith.constant 0.000000e+00 : f32
    %61 = vector.broadcast %cst_24 : f32 to vector<4x33xf32>
    %62 = tpu.concatenate %60, %61 in 1 : vector<4x95xf32>, vector<4x33xf32> -> vector<4x128xf32>
    %c15_i32_25 = arith.constant 15 : i32
    %63 = vector.broadcast %c15_i32_25 : i32 to vector<4x128xi32>
    %64 = arith.cmpi slt, %16, %63 : vector<4x128xi32>
    %cst_26 = arith.constant 0.000000e+00 : f32
    %65 = vector.broadcast %cst_26 : f32 to vector<4x128xf32>
    %66 = arith.select %64, %62, %65 : vector<4x128xi1>, vector<4x128xf32>
    %c28 = arith.constant 28 : index
    %c0_27 = arith.constant 0 : index
    %67 = vector.load %arg5[%c28, %c0_27] : memref<36x128xf32, #tpu.memory_space<vmem>>, vector<4x128xf32>
    tpu.vector_store %arg5[%c28, %c0_27], %66 {strides = array<i32>} : memref<36x128xf32, #tpu.memory_space<vmem>>, vector<4x128xf32>,
    %68 = vector.extract_strided_slice %18 {offsets = [0, 34], sizes = [4, 94], strides = [1, 1]} : vector<4x128xf32> to vector<4x94xf32>
    %cst_28 = arith.constant 0.000000e+00 : f32
    %69 = vector.broadcast %cst_28 : f32 to vector<4x34xf32>
    %70 = tpu.concatenate %68, %69 in 1 : vector<4x94xf32>, vector<4x34xf32> -> vector<4x128xf32>
    %c14_i32_29 = arith.constant 14 : i32
    %71 = vector.broadcast %c14_i32_29 : i32 to vector<4x128xi32>
    %72 = arith.cmpi slt, %16, %71 : vector<4x128xi32>
    %cst_30 = arith.constant 0.000000e+00 : f32
    %73 = vector.broadcast %cst_30 : f32 to vector<4x128xf32>
    %74 = arith.select %72, %70, %73 : vector<4x128xi1>, vector<4x128xf32>
    %c32 = arith.constant 32 : index
    %c0_31 = arith.constant 0 : index
    %75 = vector.load %arg5[%c32, %c0_31] : memref<36x128xf32, #tpu.memory_space<vmem>>, vector<4x128xf32>
    tpu.vector_store %arg5[%c32, %c0_31], %74 {strides = array<i32>} : memref<36x128xf32, #tpu.memory_space<vmem>>, vector<4x128xf32>,
    %c0_32 = arith.constant 0 : index
    %c0_33 = arith.constant 0 : index
    %76 = vector.load %arg2[%c0_32, %c0_33] : memref<8x36xf32, #tpu.memory_space<vmem>>, vector<8x36xf32>
    %c0_34 = arith.constant 0 : index
    %c0_35 = arith.constant 0 : index
    %77 = vector.load %arg5[%c0_34, %c0_35] : memref<36x128xf32, #tpu.memory_space<vmem>>, vector<36x128xf32>
    %cst_36 = arith.constant dense<0.000000e+00> : vector<8x128xf32>
    %78 = tpu.matmul %76, %77, %cst_36 {dimension_numbers = #tpu.dot_dimension_numbers<[1], [0], [0], [1], [0, 0, 1, 1], [], []>, precision = #tpu.contract_precision<fp32>} : vector<8x36xf32>, vector<36x128xf32>, vector<8x128xf32> -> vector<8x128xf32>
    %c0_37 = arith.constant 0 : index
    %c0_38 = arith.constant 0 : index
    %79 = vector.load %arg3[%c0_37, %c0_38] : memref<8x1xf32, #tpu.memory_space<vmem>>, vector<8x1xf32>
    %80 = vector.broadcast %79 : vector<8x1xf32> to vector<8x128xf32>
    %81 = arith.addf %78, %80 : vector<8x128xf32>
    %cst_39 = arith.constant 0.000000e+00 : f32
    %82 = vector.broadcast %cst_39 : f32 to vector<8x128xf32>
    %83 = arith.maximumf %81, %82 : vector<8x128xf32>
    %cst_40 = arith.constant dense<0xFF800000> : vector<128xf32>
    %84 = vector.multi_reduction <maximumf>, %83, %cst_40 [0] : vector<8x128xf32> to vector<128xf32>
    %85 = vector.shape_cast %84 : vector<128xf32> to vector<1x128xf32>
    %86 = vector.extract_strided_slice %85 {offsets = [0, 0], sizes = [1, 16], strides = [1, 1]} : vector<1x128xf32> to vector<1x16xf32>
    %c0_41 = arith.constant 0 : index
    %c0_42 = arith.constant 0 : index
    %87 = vector.load %arg6[%c0_41, %c0_42] : memref<8x16xf32, #tpu.memory_space<vmem>>, vector<1x16xf32>
    tpu.vector_store %arg6[%c0_41, %c0_42], %86 {strides = array<i32>} : memref<8x16xf32, #tpu.memory_space<vmem>>, vector<1x16xf32>,
    %88 = vector.extract_strided_slice %85 {offsets = [0, 16], sizes = [1, 16], strides = [1, 1]} : vector<1x128xf32> to vector<1x16xf32>
    %c1 = arith.constant 1 : index
    %c0_43 = arith.constant 0 : index
    %89 = vector.load %arg6[%c1, %c0_43] : memref<8x16xf32, #tpu.memory_space<vmem>>, vector<1x16xf32>
    tpu.vector_store %arg6[%c1, %c0_43], %88 {strides = array<i32>} : memref<8x16xf32, #tpu.memory_space<vmem>>, vector<1x16xf32>,
    %90 = vector.extract_strided_slice %85 {offsets = [0, 32], sizes = [1, 16], strides = [1, 1]} : vector<1x128xf32> to vector<1x16xf32>
    %c2 = arith.constant 2 : index
    %c0_44 = arith.constant 0 : index
    %91 = vector.load %arg6[%c2, %c0_44] : memref<8x16xf32, #tpu.memory_space<vmem>>, vector<1x16xf32>
    tpu.vector_store %arg6[%c2, %c0_44], %90 {strides = array<i32>} : memref<8x16xf32, #tpu.memory_space<vmem>>, vector<1x16xf32>,
    %92 = vector.extract_strided_slice %85 {offsets = [0, 48], sizes = [1, 16], strides = [1, 1]} : vector<1x128xf32> to vector<1x16xf32>
    %c3 = arith.constant 3 : index
    %c0_45 = arith.constant 0 : index
    %93 = vector.load %arg6[%c3, %c0_45] : memref<8x16xf32, #tpu.memory_space<vmem>>, vector<1x16xf32>
    tpu.vector_store %arg6[%c3, %c0_45], %92 {strides = array<i32>} : memref<8x16xf32, #tpu.memory_space<vmem>>, vector<1x16xf32>,
    %94 = vector.extract_strided_slice %85 {offsets = [0, 64], sizes = [1, 16], strides = [1, 1]} : vector<1x128xf32> to vector<1x16xf32>
    %c4_46 = arith.constant 4 : index
    %c0_47 = arith.constant 0 : index
    %95 = vector.load %arg6[%c4_46, %c0_47] : memref<8x16xf32, #tpu.memory_space<vmem>>, vector<1x16xf32>
    tpu.vector_store %arg6[%c4_46, %c0_47], %94 {strides = array<i32>} : memref<8x16xf32, #tpu.memory_space<vmem>>, vector<1x16xf32>,
    %96 = vector.extract_strided_slice %85 {offsets = [0, 80], sizes = [1, 16], strides = [1, 1]} : vector<1x128xf32> to vector<1x16xf32>
    %c5 = arith.constant 5 : index
    %c0_48 = arith.constant 0 : index
    %97 = vector.load %arg6[%c5, %c0_48] : memref<8x16xf32, #tpu.memory_space<vmem>>, vector<1x16xf32>
    tpu.vector_store %arg6[%c5, %c0_48], %96 {strides = array<i32>} : memref<8x16xf32, #tpu.memory_space<vmem>>, vector<1x16xf32>,
    %98 = vector.extract_strided_slice %85 {offsets = [0, 96], sizes = [1, 16], strides = [1, 1]} : vector<1x128xf32> to vector<1x16xf32>
    %c6 = arith.constant 6 : index
    %c0_49 = arith.constant 0 : index
    %99 = vector.load %arg6[%c6, %c0_49] : memref<8x16xf32, #tpu.memory_space<vmem>>, vector<1x16xf32>
    tpu.vector_store %arg6[%c6, %c0_49], %98 {strides = array<i32>} : memref<8x16xf32, #tpu.memory_space<vmem>>, vector<1x16xf32>,
    %100 = vector.extract_strided_slice %85 {offsets = [0, 112], sizes = [1, 16], strides = [1, 1]} : vector<1x128xf32> to vector<1x16xf32>
    %c7 = arith.constant 7 : index
    %c0_50 = arith.constant 0 : index
    %101 = vector.load %arg6[%c7, %c0_50] : memref<8x16xf32, #tpu.memory_space<vmem>>, vector<1x16xf32>
    tpu.vector_store %arg6[%c7, %c0_50], %100 {strides = array<i32>} : memref<8x16xf32, #tpu.memory_space<vmem>>, vector<1x16xf32>,
    %c0_51 = arith.constant 0 : index
    %c0_52 = arith.constant 0 : index
    %102 = vector.load %arg6[%c0_51, %c0_52] : memref<8x16xf32, #tpu.memory_space<vmem>>, vector<8x16xf32>
    %103 = tpu.iota {dimensions = array<i32: 1>} : vector<8x16xi32>
    %104 = tpu.iota {dimensions = array<i32: 1>} : vector<8x4xi32>
    %cst_53 = arith.constant 0.000000e+00 : f32
    %105 = vector.broadcast %cst_53 : f32 to vector<8x4xf32>
    %cst_54 = arith.constant dense<0xFF800000> : vector<8xf32>
    %106 = vector.multi_reduction <maximumf>, %102, %cst_54 [1] : vector<8x16xf32> to vector<8xf32>
    %107 = vector.shape_cast %106 : vector<8xf32> to vector<8x1xf32>
    %c0_i32_55 = arith.constant 0 : i32
    %108 = vector.broadcast %c0_i32_55 : i32 to vector<8x4xi32>
    %109 = arith.cmpi eq, %104, %108 : vector<8x4xi32>
    %110 = vector.shape_cast %107 : vector<8x1xf32> to vector<8x1xf32>
    %111 = vector.broadcast %110 : vector<8x1xf32> to vector<8x4xf32>
    %112 = arith.select %109, %111, %105 : vector<8x4xi1>, vector<8x4xf32>
    %113 = vector.broadcast %107 : vector<8x1xf32> to vector<8x16xf32>
    %114 = arith.cmpf oeq, %102, %113 : vector<8x16xf32>
    %c16_i32_56 = arith.constant 16 : i32
    %115 = vector.broadcast %c16_i32_56 : i32 to vector<8x16xi32>
    %116 = arith.select %114, %103, %115 : vector<8x16xi1>, vector<8x16xi32>
    %cst_57 = arith.constant dense<2147483647> : vector<8xi32>
    %117 = vector.multi_reduction <minsi>, %116, %cst_57 [1] : vector<8x16xi32> to vector<8xi32>
    %118 = vector.shape_cast %117 : vector<8xi32> to vector<8x1xi32>
    %119 = vector.broadcast %118 : vector<8x1xi32> to vector<8x16xi32>
    %120 = arith.cmpi eq, %103, %119 : vector<8x16xi32>
    %cst_58 = arith.constant 0xFF800000 : f32
    %121 = vector.broadcast %cst_58 : f32 to vector<8x16xf32>
    %122 = arith.select %120, %121, %102 : vector<8x16xi1>, vector<8x16xf32>
    %cst_59 = arith.constant dense<0xFF800000> : vector<8xf32>
    %123 = vector.multi_reduction <maximumf>, %122, %cst_59 [1] : vector<8x16xf32> to vector<8xf32>
    %124 = vector.shape_cast %123 : vector<8xf32> to vector<8x1xf32>
    %c1_i32_60 = arith.constant 1 : i32
    %125 = vector.broadcast %c1_i32_60 : i32 to vector<8x4xi32>
    %126 = arith.cmpi eq, %104, %125 : vector<8x4xi32>
    %127 = vector.shape_cast %124 : vector<8x1xf32> to vector<8x1xf32>
    %128 = vector.broadcast %127 : vector<8x1xf32> to vector<8x4xf32>
    %129 = arith.select %126, %128, %112 : vector<8x4xi1>, vector<8x4xf32>
    %130 = vector.broadcast %124 : vector<8x1xf32> to vector<8x16xf32>
    %131 = arith.cmpf oeq, %122, %130 : vector<8x16xf32>
    %c16_i32_61 = arith.constant 16 : i32
    %132 = vector.broadcast %c16_i32_61 : i32 to vector<8x16xi32>
    %133 = arith.select %131, %103, %132 : vector<8x16xi1>, vector<8x16xi32>
    %cst_62 = arith.constant dense<2147483647> : vector<8xi32>
    %134 = vector.multi_reduction <minsi>, %133, %cst_62 [1] : vector<8x16xi32> to vector<8xi32>
    %135 = vector.shape_cast %134 : vector<8xi32> to vector<8x1xi32>
    %136 = vector.broadcast %135 : vector<8x1xi32> to vector<8x16xi32>
    %137 = arith.cmpi eq, %103, %136 : vector<8x16xi32>
    %cst_63 = arith.constant 0xFF800000 : f32
    %138 = vector.broadcast %cst_63 : f32 to vector<8x16xf32>
    %139 = arith.select %137, %138, %122 : vector<8x16xi1>, vector<8x16xf32>
    %cst_64 = arith.constant dense<0xFF800000> : vector<8xf32>
    %140 = vector.multi_reduction <maximumf>, %139, %cst_64 [1] : vector<8x16xf32> to vector<8xf32>
    %141 = vector.shape_cast %140 : vector<8xf32> to vector<8x1xf32>
    %c2_i32 = arith.constant 2 : i32
    %142 = vector.broadcast %c2_i32 : i32 to vector<8x4xi32>
    %143 = arith.cmpi eq, %104, %142 : vector<8x4xi32>
    %144 = vector.shape_cast %141 : vector<8x1xf32> to vector<8x1xf32>
    %145 = vector.broadcast %144 : vector<8x1xf32> to vector<8x4xf32>
    %146 = arith.select %143, %145, %129 : vector<8x4xi1>, vector<8x4xf32>
    %147 = vector.broadcast %141 : vector<8x1xf32> to vector<8x16xf32>
    %148 = arith.cmpf oeq, %139, %147 : vector<8x16xf32>
    %c16_i32_65 = arith.constant 16 : i32
    %149 = vector.broadcast %c16_i32_65 : i32 to vector<8x16xi32>
    %150 = arith.select %148, %103, %149 : vector<8x16xi1>, vector<8x16xi32>
    %cst_66 = arith.constant dense<2147483647> : vector<8xi32>
    %151 = vector.multi_reduction <minsi>, %150, %cst_66 [1] : vector<8x16xi32> to vector<8xi32>
    %152 = vector.shape_cast %151 : vector<8xi32> to vector<8x1xi32>
    %153 = vector.broadcast %152 : vector<8x1xi32> to vector<8x16xi32>
    %154 = arith.cmpi eq, %103, %153 : vector<8x16xi32>
    %cst_67 = arith.constant 0xFF800000 : f32
    %155 = vector.broadcast %cst_67 : f32 to vector<8x16xf32>
    %156 = arith.select %154, %155, %139 : vector<8x16xi1>, vector<8x16xf32>
    %cst_68 = arith.constant dense<0xFF800000> : vector<8xf32>
    %157 = vector.multi_reduction <maximumf>, %156, %cst_68 [1] : vector<8x16xf32> to vector<8xf32>
    %158 = vector.shape_cast %157 : vector<8xf32> to vector<8x1xf32>
    %c3_i32 = arith.constant 3 : i32
    %159 = vector.broadcast %c3_i32 : i32 to vector<8x4xi32>
    %160 = arith.cmpi eq, %104, %159 : vector<8x4xi32>
    %161 = vector.shape_cast %158 : vector<8x1xf32> to vector<8x1xf32>
    %162 = vector.broadcast %161 : vector<8x1xf32> to vector<8x4xf32>
    %163 = arith.select %160, %162, %146 : vector<8x4xi1>, vector<8x4xf32>
    %c0_69 = arith.constant 0 : index
    %c0_70 = arith.constant 0 : index
    %164 = vector.load %arg4[%c0_69, %c0_70] : memref<8x4xf32, #tpu.memory_space<vmem>>, vector<8x4xf32>
    tpu.vector_store %arg4[%c0_69, %c0_70], %163 {strides = array<i32>} : memref<8x4xf32, #tpu.memory_space<vmem>>, vector<8x4xf32>,
    return
  }
  func.func @transform_0(%arg0: i32) -> (i32, i32, i32) {
    %c0_i32 = arith.constant 0 : i32
    %c0_i32_0 = arith.constant 0 : i32
    %c0_i32_1 = arith.constant 0 : i32
    return %arg0, %c0_i32, %c0_i32_0 : i32, i32, i32
  }
  func.func @transform_1(%arg0: i32) -> (i32, i32) {
    %c0_i32 = arith.constant 0 : i32
    %c0_i32_0 = arith.constant 0 : i32
    %c0_i32_1 = arith.constant 0 : i32
    return %c0_i32, %c0_i32_0 : i32, i32
  }
  func.func @transform_2(%arg0: i32) -> (i32, i32) {
    %c0_i32 = arith.constant 0 : i32
    %c0_i32_0 = arith.constant 0 : i32
    %c0_i32_1 = arith.constant 0 : i32
    return %c0_i32, %c0_i32_0 : i32, i32
  }
  func.func @transform_3(%arg0: i32) -> (i32, i32) {
    %c0_i32 = arith.constant 0 : i32
    %c0_i32_0 = arith.constant 0 : i32
    return %arg0, %c0_i32 : i32, i32
  }
}

</mosaic_0001>

<bundles_post_ra>
// kernel: pacrr_conv_max2d.1
= control target key start
LH: loop header
LB: loop body
LE: loop exit
PB: predicated region body
PF: predicated region fallthrough
CT: control target
= control target key end

     0   :  { %s1169_s12 = smov 0   ;;  %s1308_s0 = inlined_call_operand.vmem [shape: f32[2,4,128], index: 0, kind: input, shape index: {}]   ;;  %s1309_s1 = inlined_call_operand.vmem [shape: f32[8,36], index: 1, kind: input, shape index: {}]   ;;  %s1310_s2 = inlined_call_operand.vmem [shape: f32[8,1], index: 2, kind: input, shape index: {}]   ;;  %s1311_s3 = inlined_call_operand.vmem [shape: f32[16,4], index: 3, kind: output, shape index: {}]  }
   0x1 LB: > { %s929_s13 = sadd.s32 4294967295, %s1130_s12   ;;  %p933_p0 = scmp.ge.s32.totalorder %s1130_s12, 1  ;;  %s1130_s12 = sphi %s1169_s12, %s13_s12  }
   0x2   : > { %p136_p1 = scmp.lt.s32.totalorder %s1130_s12, 3 }
   0x4   : > { %p137_p2 = pnand %p933_p0, %p136_p1 }
   0x5   : > { %p158_p3 = scmp.lt.s32.totalorder (!%p137_p2), %s929_s13, 1  ;;  %s1132_s18 = smov (!%p137_p2), 112   ;;  %v1134_v1 = vmov (!%p137_p2), 0.0|0.0   ;;  %vm1141_vm0 = vmmov (!%p137_p2), 0   ;;  %v1142_v2 = vmov (!%p137_p2), 0.0   ;;  %v245_v3 = vld [vmem:[%s1310_s2] sm:$0xff] (!%p137_p2)  ;;  %v166_v5 = vlaneseq (!%p137_p2) }
   0x6   : > { %140 = sbr.rel (%p137_p2) target bundleno = 2020 (0x7e4), region = 32  ;;  %s1133_s19 = smov (!%p137_p2), 127   ;;  %1052 = vmatprep.subr.bf16.mxu1 (!%p137_p2), %v1134_v1  ;;  %1070 = vmatprep.subr.bf16.mxu0 (!%p137_p2), %v1134_v1  ;;  %v1143_v4 = vmov (!%p137_p2), 0   ;;  %vm202_vm1 = vcmask (!%p137_p2), 916480   ;;  %vm186_vm2 = vcmask (!%p137_p2), 1039360   ;;  %vm208_vm4 = vcmask (!%p137_p2), 908288  }
   0x7   : > { %s1135_s20 = smov (!%p137_p2), 111   ;;  %s1136_s21 = smov (!%p137_p2), 126   ;;  %984 = vmatprep.mubr.msk.f32.mxu1 (!%p137_p2), %vm1141_vm0, %v1142_v2  ;;  %1023 = vmatprep.mubr.msk.f32.mxu0 (!%p137_p2), %vm1141_vm0, %v1142_v2  ;;  %v1194_v6 = vand.u32 (!%p137_p2), 127, %v166_v5  ;;  %vm194_vm5 = vcmask (!%p137_p2), 1031168   ;;  %vm228_vm7 = vcmask (!%p137_p2), 777216   ;;  %vm215_vm8 = vcmask (!%p137_p2), 900096  }
   0x8   : > { %s1137_s22 = smov (!%p137_p2), 95   ;;  %s1138_s23 = smov (!%p137_p2), 110   ;;  %1123 = vset.pattern.permute.xlu0 (!%p137_p2), %v1143_v4  ;;  %v239_v21 = vld [vmem:[%s1309_s1] sm:$0xff] (!%p137_p2)  ;;  %vm251_vm9 = vcmask (!%p137_p2), 293888   ;;  %vm235_vm10 = vcmask (!%p137_p2), 769024   ;;  %vm222_vm11 = vcmask (!%p137_p2), 785408  }
   0x9   : > { %s1139_s24 = smov (!%p137_p2), 94   ;;  %s1140_s25 = smov (!%p137_p2), 96   ;;  %v172_v7 = vand.u32 (!%p137_p2), 15, %v1194_v6  ;;  %v253_v26 = vsel (!%p137_p2), %vm251_vm9, %v239_v21, 0  ;;  %vm255_vm12 = vcmask (!%p137_p2), 1043456   ;;  %vm764_vm13 = vcmask (!%p137_p2), 122880  }
   0xa   : > { %v1218_v32 = vand.u32 (!%p137_p2), 4294901760, %v253_v26  ;;  %s1144_s30 = smov (!%p137_p2), 80   ;;  %s1145_s4 = smov (!%p137_p2), 48   ;;  %vm796_vm14 = vcmask (!%p137_p2), 130048   ;;  %vm824_vm9 = vcmp.eq.s32.totalorder (!%p137_p2), %v1194_v6, 1 }
   0xb   : > { %vm1197_vm3 = vcmp.lt.s32.totalorder (!%p137_p2), %v172_v7, 15  ;;  %vm1203_vm6 = vcmp.lt.s32.totalorder (!%p137_p2), %v172_v7, 14  ;;  %s1146_s5 = smov (!%p137_p2), 16   ;;  %s1147_s6 = smov (!%p137_p2), 64  }
   0xc   : > { %v1223_v39 = vsub.f32 (!%p137_p2), %v253_v26, %v1218_v32  ;;  %s1148_s7 = smov (!%p137_p2), 32  }
   0xd   : > { %s1317_s13 = smov (!%p158_p3, %s929_s13), 1 }
   0xe   : > { %s934_s14 = sshll.u32 %s1317_s13, 2  ;;  %v331_v46 = vand.u32 4294901760, %v1223_v39  ;;  %s935_s8 = sshll.u32 %s1317_s13, 3 }
   0xf   : > { %s161_s17 = scalar_lea.vmem %s1308_s0, %s934_s14  ;;  %s165_s11 = scalar_lea.vmem %s1311_s3, %s935_s8 }
  0x10   : > { %v180_v0 = vld [vmem:[%s161_s17] sm:$0xf]  ;;  %v332_v57 = vsub.f32 %v1223_v39, %v331_v46 }
  0x11   : > { %199 = vrot.lane.b32.xlu1 %v180_v0, %s1132_s18  ;;  %181 = vst [vmem:[#allocation2] sm:$0xf] %v180_v0  ;;  %183 = vrot.lane.b32.xlu0 %v180_v0, %s1133_s19 }
  0x12   : > { %v333_v63 = vand.u32 4294901760, %v332_v57 }
  0x15   : > { %205 = vrot.lane.b32.xlu1 %v180_v0, %s1135_s20  ;;  %191 = vrot.lane.b32.xlu0 %v180_v0, %s1136_s21 }
  0x19   : > { %225 = vrot.lane.b32.xlu1 %v180_v0, %s1137_s22  ;;  %212 = vrot.lane.b32.xlu0 %v180_v0, %s1138_s23 }
  0x1d   : > { %232 = vrot.lane.b32.xlu1 %v180_v0, %s1139_s24  ;;  %219 = vrot.lane.b32.xlu0 %v180_v0, %s1140_s25 }
  0x21   : > { %248 = vperm.xlu0 %1123, %v245_v3  }
  0x83   : > { %v200_v9 = vpop.permute.xlu1 %199  ;;  %v184_v10 = vpop.permute.xlu0 %183 }
  0x84   : > { %v203_v11 = vsel %vm202_vm1, %v200_v9, 0.0  ;;  %v187_v12 = vsel %vm186_vm2, %v184_v10, 0.0 }
  0x85   : > { %204 = vst [vmem:[#allocation2 + $0xc] sm:$0xf] %v203_v11  ;;  %v189_v13 = vsel %vm1197_vm3, %v187_v12, 0.0 }
  0x86   : > { %190 = vst [vmem:[#allocation2 + $0x4] sm:$0xf] %v189_v13 }
  0x87   : > { %v206_v15 = vpop.permute.xlu1 %205  ;;  %v192_v16 = vpop.permute.xlu0 %191 }
  0x88   : > { %v209_v17 = vsel %vm208_vm4, %v206_v15, 0.0  ;;  %v195_v18 = vsel %vm194_vm5, %v192_v16, 0.0 }
  0x89   : > { %v210_v19 = vsel %vm1197_vm3, %v209_v17, 0.0  ;;  %v197_v20 = vsel %vm1203_vm6, %v195_v18, 0.0 }
  0x8a   : > { %211 = vst [vmem:[#allocation2 + $0x10] sm:$0xf] %v210_v19  ;;  %198 = vst [vmem:[#allocation2 + $0x8] sm:$0xf] %v197_v20 }
  0x8b   : > { %v226_v22 = vpop.permute.xlu1 %225  ;;  %v213_v23 = vpop.permute.xlu0 %212 }
  0x8c   : > { %v229_v24 = vsel %vm228_vm7, %v226_v22, 0.0  ;;  %v216_v25 = vsel %vm215_vm8, %v213_v23, 0.0  ;;  %vm800_vm8 = vcmp.eq.s32.totalorder %v1194_v6, 0 }
  0x8d   : > { %v230_v27 = vsel %vm1197_vm3, %v229_v24, 0.0  ;;  %v217_v28 = vsel %vm1203_vm6, %v216_v25, 0.0  ;;  %v240_v29 = vld [vmem:[#allocation2] sm:$0xff] }
  0x8e   : > { %231 = vst [vmem:[#allocation2 + $0x1c] sm:$0xf] %v230_v27  ;;  %218 = vst [vmem:[#allocation2 + $0x14] sm:$0xf] %v217_v28  ;;  %v260_v35 = vand.u32 4294901760, %v240_v29 }
  0x8f   : > { %v233_v30 = vpop.permute.xlu1 %232  ;;  %v220_v31 = vpop.permute.xlu0 %219 }
  0x90   : > { %v236_v33 = vsel %vm235_vm10, %v233_v30, 0.0  ;;  %v223_v34 = vsel %vm222_vm11, %v220_v31, 0.0  ;;  %v1227_v41 = vsub.f32 %v240_v29, %v260_v35  ;;  %vm848_vm10 = vcmp.eq.s32.totalorder %v1194_v6, 2 }
  0x91   : > { %v237_v36 = vsel %vm1203_vm6, %v236_v33, 0.0  ;;  %224 = vst [vmem:[#allocation2 + $0x18] sm:$0xf] %v223_v34  ;;  %v241_v37 = vld [vmem:[#allocation2 + $0x8] sm:$0xff]  ;;  %vm872_vm11 = vcmp.eq.s32.totalorder %v1194_v6, 3 }
  0x92   : > { %238 = vst [vmem:[#allocation2 + $0x20] sm:$0xf] %v237_v36  ;;  %v263_v38 = vand.u32 4294901760, %v241_v37  ;;  %v342_v49 = vand.u32 4294901760, %v1227_v41 }
  0x94   : > { %v1225_v40 = vpack.c.bf16 %v263_v38, %v260_v35  ;;  %v1229_v42 = vsub.f32 %v241_v37, %v263_v38  ;;  %v343_v58 = vsub.f32 %v1227_v41, %v342_v49 }
  0x95   : > { %v242_v43 = vld [vmem:[#allocation2 + $0x10] sm:$0xff] }
  0x96   : > { %1054 = vmatpush3.bf16.msra.mxu1 %v1225_v40  ;;  %1072 = vmatpush3.bf16.msra.mxu0 %v1225_v40  ;;  %v266_v44 = vand.u32 4294901760, %v242_v43  ;;  %v349_v45 = vand.u32 4294901760, %v1229_v42  ;;  %v344_v3 = vand.u32 4294901760, %v343_v58  ;;  %v1065_v15 = vpack.c.bf16 %v1229_v42, %v1227_v41 }
  0x97   : > { %1055 = vmatprep.subr.bf16.mxu1 %v1134_v1  ;;  %1073 = vmatprep.subr.bf16.mxu0 %v1134_v1 }
  0x98   : > { %v243_v47 = vld [vmem:[#allocation2 + $0x18] sm:$0xff]  ;;  %v355_v48 = vsub.f32 %v242_v43, %v266_v44  ;;  %v350_v53 = vsub.f32 %v1229_v42, %v349_v45  ;;  %v1077_v7 = vpack.c.bf16 %v349_v45, %v342_v49 }
  0x99   : > { %v269_v50 = vand.u32 4294901760, %v243_v47  ;;  %v244_v51 = vld [vmem:[#allocation2 + $0x20] sm:$0xf] }
  0x9a   : > { %v257_v52 = vsel %vm255_vm12, %v244_v51, 0  ;;  %v356_v59 = vand.u32 4294901760, %v355_v48  ;;  %v351_v62 = vand.u32 4294901760, %v350_v53  ;;  %vm874_vm12 = vcmask 31744  }
  0x9b   : > { %v1056_v54 = vpack.c.bf16 %v269_v50, %v266_v44  ;;  %v362_v55 = vsub.f32 %v243_v47, %v269_v50  ;;  %v272_v56 = vand.u32 4294901760, %v257_v52 }
  0x9c   : > { %v357_v4 = vsub.f32 %v355_v48, %v356_v59  ;;  %v1059_v5 = vpack.c.bf16 %v351_v62, %v344_v3 }
  0x9d   : > { %1057 = vmatpush3.bf16.msra.mxu1 %v1056_v54  ;;  %1075 = vmatpush3.bf16.msra.mxu0 %v1056_v54  ;;  %v363_v60 = vand.u32 4294901760, %v362_v55  ;;  %v369_v61 = vsub.f32 %v257_v52, %v272_v56  ;;  %v1068_v16 = vpack.c.bf16 %v362_v55, %v355_v48 }
  0x9e   : > { %982 = vmatprep.subr.mxu1 %v1142_v2  ;;  %1021 = vmatprep.subr.mxu0 %v1142_v2  ;;  %v358_v10 = vand.u32 4294901760, %v357_v4 }
  0x9f   : > { %v364_v0 = vsub.f32 %v362_v55, %v363_v60  ;;  %v370_v9 = vand.u32 4294901760, %v369_v61  ;;  %v1080_v12 = vpack.c.bf16 %v363_v60, %v356_v59 }
  0xa1   : > { %983 = vmatpush3.msra.mxu1 %v272_v56  ;;  %1022 = vmatpush3.msra.mxu0 %v272_v56  ;;  %v365_v8 = vand.u32 4294901760, %v364_v0  ;;  %v371_v13 = vsub.f32 %v369_v61, %v370_v9 }
  0xa2   : > { %1058 = vmatprep.subr.bf16.mxu1 %v1134_v1  ;;  %1076 = vmatprep.subr.bf16.mxu0 %v1134_v1 }
  0xa3   : > { %985 = vmatmul.mubr.f32.vlgmr.msra.gmra.mrb[0].mxu1 %v333_v63  ;;  %1024 = vmatmul.mubr.f32.vlgmr.msra.gmra.mrb[0].mxu0 %v331_v46  ;;  %v1062_v11 = vpack.c.bf16 %v365_v8, %v358_v10  ;;  %v372_v14 = vand.u32 4294901760, %v371_v13 }
  0xa4   : > { %1060 = vmatpush3.bf16.msra.mxu1 %v1059_v5  ;;  %1078 = vmatpush3.bf16.msra.mxu0 %v1077_v7 }
  0xa5   : > { %1061 = vmatprep.subr.bf16.mxu1 %v1134_v1  ;;  %1079 = vmatprep.subr.bf16.mxu0 %v1134_v1 }
  0xa6   : > { %997 = vmatprep.mubr.msk.f32.mxu1 %vm1141_vm0, %v1142_v2  ;;  %1036 = vmatprep.mubr.msk.f32.mxu0 %vm1141_vm0, %v1142_v2 }
  0xa8   : > { %1063 = vmatpush3.bf16.msra.mxu1 %v1062_v11  ;;  %1081 = vmatpush3.bf16.msra.mxu0 %v1080_v12 }
  0xa9   : > { %995 = vmatprep.subr.mxu1 %v1142_v2  ;;  %1034 = vmatprep.subr.mxu0 %v1142_v2 }
  0xac   : > { %996 = vmatpush3.msra.mxu1 %v372_v14  ;;  %1035 = vmatpush3.msra.mxu0 %v370_v9 }
  0xad   : > { %1064 = vmatprep.subr.bf16.mxu1 %v1134_v1  ;;  %1082 = vmatprep.subr.bf16.mxu0 %v1134_v1 }
  0xae   : > { %998 = vmatmul.mubr.f32.vlgmr.msra.gmra.mrb[0].mxu1 %v1218_v32  ;;  %1037 = vmatmul.mubr.f32.vlgmr.msra.gmra.mrb[0].mxu0 %v1218_v32 }
  0xaf   : > { %1066 = vmatpush3.bf16.msra.mxu1 %v1065_v15  ;;  %1084 = vmatpush3.bf16.msra.mxu0 %v1225_v40 }
  0xb0   : > { %1067 = vmatprep.subr.bf16.mxu1 %v1134_v1  ;;  %1085 = vmatprep.subr.bf16.mxu0 %v1134_v1  ;;  %v249_v1 = vpop.permute.xlu0 %248 }
  0xb1   : > { %1010 = vmatprep.mubr.msk.f32.mxu1 %vm1141_vm0, %v1142_v2  ;;  %1049 = vmatprep.mubr.msk.f32.mxu0 %vm1141_vm0, %v1142_v2 }
  0xb3   : > { %1069 = vmatpush3.bf16.msra.mxu1 %v1068_v16  ;;  %1087 = vmatpush3.bf16.msra.mxu0 %v1056_v54 }
  0xb4   : > { %1008 = vmatprep.subr.mxu1 %v1142_v2  ;;  %1047 = vmatprep.subr.mxu0 %v1142_v2 }
  0xb7   : > { %1009 = vmatpush3.msra.mxu1 %v369_v61  ;;  %1048 = vmatpush3.msra.mxu0 %v272_v56 }
  0xb8   : > { %1011 = vmatmul.mubr.f32.vlgmr.msra.gmra.mrb[0].mxu1 %v1223_v39  ;;  %1050 = vmatmul.mubr.f32.vlgmr.msra.gmra.mrb[0].mxu0 %v1218_v32 }
 0x18b   : > { %v513_v17 = vpop.f32.mrb[0].mxu1  ;;  %v753_v18 = vpop.f32.mrb[0].mxu0 }
 0x18c   : > { %v1088_v19 = vadd.f32 %v513_v17, %v249_v1  ;;  %v1012_v20 = vpop.f32.mrb[1].mxu1  ;;  %v1051_v21 = vpop.f32.mrb[1].mxu0 }
 0x18e   : > { %v1089_v22 = vadd.f32 %v1088_v19, %v753_v18 }
 0x190   : > { %v757_v23 = vmax.f32 %v1089_v22, 0.0 }
 0x192   : > { %v758_v24 = vrot.slane %v757_v23, 4 }
 0x194   : > { %v759_v25 = vmax.f32 %v757_v23, %v758_v24 }
 0x196   : > { %v760_v26 = vrot.slane %v759_v25, 2 }
 0x198   : > { %v761_v27 = vmax.f32 %v759_v25, %v760_v26 }
 0x19a   : > { %v762_v28 = vrot.slane %v761_v27, 1 }
 0x19c   : > { %v763_v2 = vmax.f32 %v761_v27, %v762_v28 }
 0x19e   : > { %775 = vrot.lane.b32.xlu0 %v763_v2, %s1144_s30  ;;  %767 = vrot.lane.b32.xlu1 %v763_v2, %s1132_s18  ;;  %765 = vst.msk [vmem:[#allocation3] sm:$0x1] %vm764_vm13, %v763_v2 }
 0x1a2   : > { %783 = vrot.lane.b32.xlu0 %v763_v2, %s1145_s4  ;;  %771 = vrot.lane.b32.xlu1 %v763_v2, %s1140_s25 }
 0x1a6   : > { %791 = vrot.lane.b32.xlu0 %v763_v2, %s1146_s5  ;;  %779 = vrot.lane.b32.xlu1 %v763_v2, %s1147_s6 }
 0x1aa   : > { %787 = vrot.lane.b32.xlu1 %v763_v2, %s1148_s7 }
 0x210   : > { %v776_v29 = vpop.permute.xlu0 %775  ;;  %v768_v30 = vpop.permute.xlu1 %767 }
 0x211   : > { %778 = vst.msk [vmem:[#allocation3 + $0x3] sm:$0x1] %vm764_vm13, %v776_v29  ;;  %770 = vst.msk [vmem:[#allocation3 + $0x1] sm:$0x1] %vm764_vm13, %v768_v30 }
 0x214   : > { %v784_v31 = vpop.permute.xlu0 %783  ;;  %v772_v32 = vpop.permute.xlu1 %771 }
 0x215   : > { %786 = vst.msk [vmem:[#allocation3 + $0x5] sm:$0x1] %vm764_vm13, %v784_v31  ;;  %774 = vst.msk [vmem:[#allocation3 + $0x2] sm:$0x1] %vm764_vm13, %v772_v32 }
 0x218   : > { %v792_v33 = vpop.permute.xlu0 %791  ;;  %v780_v34 = vpop.permute.xlu1 %779 }
 0x219   : > { %794 = vst.msk [vmem:[#allocation3 + $0x7] sm:$0x1] %vm764_vm13, %v792_v33  ;;  %782 = vst.msk [vmem:[#allocation3 + $0x4] sm:$0x1] %vm764_vm13, %v780_v34 }
 0x21c   : > { %v788_v35 = vpop.permute.xlu1 %787 }
 0x21d   : > { %790 = vst.msk [vmem:[#allocation3 + $0x6] sm:$0x1] %vm764_vm13, %v788_v35 }
 0x224   : > { %v795_v36 = vld [vmem:[#allocation3] sm:$0xff] }
 0x225   : > { %v797_v37 = vsel %vm796_vm14, %v795_v36, -inf }
 0x226   : > { %798 = vmax.xlane.f32.xlu1 %v797_v37 }
 0x2b3   : > { %v1281_v38 = vpop.xlane.xlu1 %798 }
 0x2b4   : > { %vm802_vm15 = vcmp.eq.f32.partialorder %v795_v36, %v1281_v38  ;;  %v801_v24 = vsel %vm800_vm8, %v1281_v38, 0.0 }
 0x2b5   : > { %v803_v39 = vsel %vm802_vm15, %v1194_v6, 16 }
 0x2b6   : > { %v804_v40 = vsel %vm796_vm14, %v803_v39, 2147483647 }
 0x2b7   : > { %v806_v41 = vshra.s32 %v804_v40, 16  ;;  %v805_v43 = vand.u32 65535, %v804_v40 }
 0x2b9   : > { %v808_v42 = vcvt.s32.f32 %v806_v41  ;;  %v807_v45 = vcvt.s32.f32 %v805_v43 }
 0x2bb   : > { %809 = vmin.xlane.f32.xlu0 %v808_v42 }
 0x348   : > { %v810_v44 = vpop.xlane.xlu0 %809 }
 0x349   : > { %vm811_vm0 = vcmp.eq.f32.partialorder %v808_v42, %v810_v44  ;;  %v816_v47 = vcvt.f32.s32 %v810_v44 }
 0x34a   : > { %v812_v46 = vsel %vm811_vm0, %v807_v45, inf }
 0x34b   : > { %813 = vmin.xlane.f32.xlu0 %v812_v46  ;;  %v817_v49 = vshll.u32 %v816_v47, 16 }
 0x3d8   : > { %v814_v48 = vpop.xlane.xlu0 %813 }
 0x3d9   : > { %v815_v50 = vcvt.f32.s32 %v814_v48 }
 0x3db   : > { %v818_v51 = vadd.s32 %v817_v49, %v815_v50 }
 0x3dd   : > { %vm819_vm1 = vcmp.eq.s32.totalorder %v1194_v6, %v818_v51 }
 0x3de   : > { %v820_v52 = vsel %vm819_vm1, -inf, %v795_v36 }
 0x3df   : > { %v821_v53 = vsel %vm796_vm14, %v820_v52, -inf }
 0x3e0   : > { %822 = vmax.xlane.f32.xlu1 %v821_v53 }
 0x46d   : > { %v823_v54 = vpop.xlane.xlu1 %822 }
 0x46e   : > { %vm826_vm2 = vcmp.eq.f32.partialorder %v820_v52, %v823_v54  ;;  %v825_v25 = vsel %vm824_vm9, %v823_v54, %v801_v24 }
 0x46f   : > { %v827_v55 = vsel %vm826_vm2, %v1194_v6, 16 }
 0x470   : > { %v828_v56 = vsel %vm796_vm14, %v827_v55, 2147483647 }
 0x471   : > { %v830_v57 = vshra.s32 %v828_v56, 16  ;;  %v829_v59 = vand.u32 65535, %v828_v56 }
 0x473   : > { %v832_v58 = vcvt.s32.f32 %v830_v57  ;;  %v831_v61 = vcvt.s32.f32 %v829_v59 }
 0x475   : > { %833 = vmin.xlane.f32.xlu0 %v832_v58 }
 0x502   : > { %v834_v60 = vpop.xlane.xlu0 %833 }
 0x503   : > { %vm835_vm3 = vcmp.eq.f32.partialorder %v832_v58, %v834_v60  ;;  %v840_v63 = vcvt.f32.s32 %v834_v60 }
 0x504   : > { %v836_v62 = vsel %vm835_vm3, %v831_v61, inf }
 0x505   : > { %837 = vmin.xlane.f32.xlu1 %v836_v62  ;;  %v841_v3 = vshll.u32 %v840_v63, 16 }
 0x592   : > { %v838_v0 = vpop.xlane.xlu1 %837 }
 0x593   : > { %v839_v4 = vcvt.f32.s32 %v838_v0 }
 0x595   : > { %v842_v5 = vadd.s32 %v841_v3, %v839_v4 }
 0x597   : > { %vm843_vm4 = vcmp.eq.s32.totalorder %v1194_v6, %v842_v5 }
 0x598   : > { %v844_v7 = vsel %vm843_vm4, -inf, %v820_v52 }
 0x599   : > { %v845_v8 = vsel %vm796_vm14, %v844_v7, -inf }
 0x59a   : > { %846 = vmax.xlane.f32.xlu0 %v845_v8 }
 0x627   : > { %v847_v9 = vpop.xlane.xlu0 %846 }
 0x628   : > { %vm850_vm5 = vcmp.eq.f32.partialorder %v844_v7, %v847_v9  ;;  %v849_v26 = vsel %vm848_vm10, %v847_v9, %v825_v25 }
 0x629   : > { %v851_v10 = vsel %vm850_vm5, %v1194_v6, 16 }
 0x62a   : > { %v852_v11 = vsel %vm796_vm14, %v851_v10, 2147483647 }
 0x62b   : > { %v854_v12 = vshra.s32 %v852_v11, 16  ;;  %v853_v14 = vand.u32 65535, %v852_v11 }
 0x62d   : > { %v856_v13 = vcvt.s32.f32 %v854_v12  ;;  %v855_v16 = vcvt.s32.f32 %v853_v14 }
 0x62f   : > { %857 = vmin.xlane.f32.xlu1 %v856_v13 }
 0x6bc   : > { %v858_v15 = vpop.xlane.xlu1 %857 }
 0x6bd   : > { %vm859_vm6 = vcmp.eq.f32.partialorder %v856_v13, %v858_v15  ;;  %v864_v17 = vcvt.f32.s32 %v858_v15 }
 0x6be   : > { %v860_v1 = vsel %vm859_vm6, %v855_v16, inf }
 0x6bf   : > { %861 = vmin.xlane.f32.xlu0 %v860_v1  ;;  %v865_v19 = vshll.u32 %v864_v17, 16 }
 0x74c   : > { %v862_v18 = vpop.xlane.xlu0 %861 }
 0x74d   : > { %v863_v20 = vcvt.f32.s32 %v862_v18 }
 0x74f   : > { %v866_v21 = vadd.s32 %v865_v19, %v863_v20 }
 0x751   : > { %vm867_vm7 = vcmp.eq.s32.totalorder %v1194_v6, %v866_v21 }
 0x752   : > { %v868_v22 = vsel %vm867_vm7, -inf, %v844_v7 }
 0x753   : > { %v869_v23 = vsel %vm796_vm14, %v868_v22, -inf }
 0x754   : > { %870 = vmax.xlane.f32.xlu1 %v869_v23 }
 0x7e1   : > { %v871_v27 = vpop.xlane.xlu1 %870 }
 0x7e2   : > { %v873_v28 = vsel %vm872_vm11, %v871_v27, %v849_v26 }
 0x7e3   : > { %875 = vst.msk [vmem:[%s165_s11] sm:$0xff] %vm874_vm12, %v873_v28 }
 0x7e4 PF: > { %s13_s12 = sadd.s32 1, %s1130_s12  }
 0x7e5   : > { %p10_p4 = scmp.ge.s32.totalorder %s13_s12, 4  }
 0x7e7   :  { %12 = sbr.rel (!%p10_p4) target bundleno = 1 (0x1), region = 62 }

</bundles_post_ra>
